<compile_context>
chip_gen: v5e
topology: v5e:2x2
jax: 0.10.0
libtpu: 0.0.40
codegen_flags: <defaults>
</compile_context>

<pallas_src>
import functools
import math

import jax
import jax.numpy as jnp
from jax.experimental import pallas as pl
from jax.experimental.pallas import tpu as pltpu


NEG_BIG = -1e30     # finite "-inf" for padded logit lanes (f32 only!)
MAX_T_CHUNK = 256   # per-chunk step count streamed through VMEM


def _round_up(x, m):
    return ((x + m - 1) // m) * m


# -----------------------------------------------------------------------------
# Kernel: one grid step == one chunk of timesteps; fori_loop over steps inside.
# -----------------------------------------------------------------------------
def _rnn_seq_kernel(xc_ref, h0_ref, whid_ref, out_ref, hfin_ref,
                    *, hp, t_total, t_chunk):
    """xc_ref   : (t_chunk, BP, HP+OP)  precomputed cat@Wc + inp_t@Wi + b_fused
       h0_ref   : (BP, HP)              initial hidden (read once at chunk 0)
       whid_ref : (HP, HP+OP)           fused recurrent weight [i2h | logit]
       out_ref  : (t_chunk, BP, OP)     per-step log-softmax output
       hfin_ref : (BP, HP)              hidden carrier across chunks (VMEM-resident)
    """
    c = pl.program_id(0)

    @pl.when(c == 0)
    def _init():
        hfin_ref[...] = h0_ref[...]

    w_hid = whid_ref[...]           # resident across the whole loop
    mxu_dtype = w_hid.dtype         # optionally bf16 on v5e; accumulate in f32

    def step(t, h):
        # ONE dependent matmul per step (o2o folded into w_hid columns).
        pre = xc_ref[t] + jnp.dot(h.astype(mxu_dtype), w_hid,
                                  preferred_element_type=jnp.float32)
        h_new = pre[:, :hp]
        # dropout(p=0.1): identity in eval/inference mode.
        # TODO(synk): training-mode dropout would need a pltpu.prng_* mask.
        # log-softmax: padded logit lanes are already NEG_BIG via the fused bias.
        z = pre[:, hp:]
        z = z - jnp.max(z, axis=-1, keepdims=True)
        logp = z - jnp.log(jnp.sum(jnp.exp(z), axis=-1, keepdims=True))
        out_ref[t] = logp.astype(out_ref.dtype)
        return h_new

    h0 = hfin_ref[...]
    if t_total % t_chunk == 0:
        # Static trip count; unroll short loops for LLO scheduler visibility.
        h_fin = jax.lax.fori_loop(0, t_chunk, step, h0,
                                  unroll=(t_chunk <= 32))
    else:
        # Last chunk may be partial: dynamic valid-step count.
        n_valid = jnp.minimum(t_chunk, t_total - c * t_chunk)
        h_fin = jax.lax.fori_loop(0, n_valid, step, h0)

    hfin_ref[...] = h_fin


# -----------------------------------------------------------------------------
# Parameter handling
# -----------------------------------------------------------------------------
def init_params(key, n_categories, input_size, hidden_size, output_size):
    """nn.Linear-style init U[-1/sqrt(fan_in), 1/sqrt(fan_in)].
    Weights stored (in_features, out_features) = transpose of PyTorch layout."""
    cin1 = n_categories + input_size + hidden_size
    cin2 = hidden_size + output_size
    k = jax.random.split(key, 6)

    def u(kk, shape, fan_in):
        bound = 1.0 / math.sqrt(fan_in)
        return jax.random.uniform(kk, shape, jnp.float32, -bound, bound)

    return {
        "w_i2h": u(k[0], (cin1, hidden_size), cin1),
        "b_i2h": u(k[1], (hidden_size,), cin1),
        "w_i2o": u(k[2], (cin1, output_size), cin1),
        "b_i2o": u(k[3], (output_size,), cin1),
        "w_o2o": u(k[4], (cin2, output_size), cin2),
        "b_o2o": u(k[5], (output_size,), cin2),
    }


def pack_params(params, n_categories, input_size, hidden_size, output_size,
                hp, op, weight_dtype=jnp.float32):
    """Fold o2o into the first stage, fuse [i2h | logits], split by input
    (category / input / hidden rows) and zero-pad feature dims so the column
    split lands exactly on the 128-lane boundary `hp`.  The fused bias carries
    the padded-lane mask (NEG_BIG in invalid logit columns)."""
    C, I, H, O = n_categories, input_size, hidden_size, output_size
    w_i2h, w_i2o = params["w_i2h"], params["w_i2o"]
    w_o2o_h, w_o2o_o = params["w_o2o"][:H], params["w_o2o"][H:]

    # Algebraic o2o folding:  logits = x @ W_logit + b_logit
    w_logit = w_i2h @ w_o2o_h + w_i2o @ w_o2o_o                    # (C+I+H, O)
    b_logit = (params["b_i2h"] @ w_o2o_h + params["b_i2o"] @ w_o2o_o
               + params["b_o2o"])                                  # (O,)

    w_step = jnp.concatenate([w_i2h, w_logit], axis=1)             # (C+I+H, H+O)

    def pad_cols(w):  # (rows, H+O) -> (rows, hp+op), zero padding
        return jnp.concatenate(
            [jnp.pad(w[:, :H], ((0, 0), (0, hp - H))),
             jnp.pad(w[:, H:], ((0, 0), (0, op - O)))], axis=1)

    w_step_p = pad_cols(w_step)                                    # (C+I+H, hp+op)

    b_fused = jnp.concatenate(
        [jnp.pad(params["b_i2h"], (0, hp - H)),
         jnp.pad(b_logit, (0, op - O), constant_values=NEG_BIG)])[None, :]

    return {
        "w_cat": w_step_p[:C],                                          # (C, hp+op)
        "w_inp": w_step_p[C:C + I],                                     # (I, hp+op)
        "w_hid": jnp.pad(w_step_p[C + I:],
                         ((0, hp - H), (0, 0))).astype(weight_dtype),   # (hp, hp+op)
        "b_fused": b_fused.astype(jnp.float32),                         # (1, hp+op)
    }


# -----------------------------------------------------------------------------
# Wrapper: one pallas_call per sequence; grid iterates over T-chunks only.
# -----------------------------------------------------------------------------
def rnn_forward_seq(category, input_seq, hidden0, packed, *,
                    hidden_size, output_size, max_t_chunk=MAX_T_CHUNK):
    """category: (B, C); input_seq: (T, B, I); hidden0: (B, H)
    -> (T, B, O) log-probs, (B, H) final hidden."""
    T, B, I = input_seq.shape
    H, O = hidden_size, output_size
    HP = packed["w_hid"].shape[0]
    FP = packed["w_hid"].shape[1]   # HP + OP
    OP = FP - HP
    BP = _round_up(B, 8)

    catp = jnp.pad(category, ((0, BP - B), (0, 0))).astype(jnp.float32)
    inpp = jnp.pad(input_seq, ((0, 0), (0, BP - B), (0, 0))).astype(jnp.float32)
    h0p = jnp.pad(hidden0, ((0, BP - B), (0, HP - H))).astype(jnp.float32)

    # Non-recurrent per-step contribution precomputed as one XLA matmul:
    #   xc[t] = cat @ W_cat + inp[t] @ W_inp + b_fused       (T, BP, HP+OP)
    # (keeps the tiny K=I matmul and the lane-sparse input DMA out of the
    #  serial per-step path; the fused bias already carries the NEG_BIG mask).
    base = catp @ packed["w_cat"] + packed["b_fused"]               # (BP, FP)
    xc = jnp.einsum("tbi,if->tbf", inpp, packed["w_inp"]) + base[None]

    t_chunk = min(T, max_t_chunk)
    num_chunks = pl.cdiv(T, t_chunk)
    TP = num_chunks * t_chunk
    if TP != T:
        xc = jnp.pad(xc, ((0, TP - T), (0, 0), (0, 0)))

    kernel = functools.partial(_rnn_seq_kernel, hp=HP, t_total=T,
                               t_chunk=t_chunk)

    out_p, hfin_p = pl.pallas_call(
        kernel,
        out_shape=(jax.ShapeDtypeStruct((TP, BP, OP), jnp.float32),
                   jax.ShapeDtypeStruct((BP, HP), jnp.float32)),
        grid_spec=pltpu.PrefetchScalarGridSpec(
            num_scalar_prefetch=0,
            grid=(num_chunks,),
            in_specs=[
                pl.BlockSpec((t_chunk, BP, FP), lambda c: (c, 0, 0)),  # xc chunk
                pl.BlockSpec((BP, HP), lambda c: (0, 0)),              # h0
                pl.BlockSpec((HP, FP), lambda c: (0, 0)),              # w_hid
            ],
            out_specs=(pl.BlockSpec((t_chunk, BP, OP), lambda c: (c, 0, 0)),
                       pl.BlockSpec((BP, HP), lambda c: (0, 0))),
        ),
        compiler_params=pltpu.CompilerParams(
            dimension_semantics=("arbitrary",)),   # sequential recurrence
    )(xc, h0p, packed["w_hid"])

    return out_p[:T, :B, :O], hfin_p[:B, :H]


# -----------------------------------------------------------------------------
# Pure-JAX reference (unfused, unpadded) for correctness checking.
# -----------------------------------------------------------------------------
def rnn_forward_ref(category, input_seq, hidden0, params):
    def step(h, inp):
        x = jnp.concatenate([category, inp, h], axis=1)
        h_new = x @ params["w_i2h"] + params["b_i2h"]
        o1 = x @ params["w_i2o"] + params["b_i2o"]
        o2 = jnp.concatenate([h_new, o1], axis=1) @ params["w_o2o"] + params["b_o2o"]
        return h_new, jax.nn.log_softmax(o2, axis=1)

    h_final, outs = jax.lax.scan(step, hidden0, input_seq)
    return outs, h_final


if __name__ == "__main__":
    # Small shapes consistent with the module (n_categories>0 to exercise the
    # category path; the tutorial's list is empty, but the forward is generic).
    batch = 2
    seq_len = 8
    n_categories = 4
    input_size = 8
    hidden_size = 32
    output_size = 8
    HP = _round_up(hidden_size, 128)   # 128
    OP = _round_up(output_size, 128)   # 128

    key = jax.random.PRNGKey(0)
    kp, kc, ki = jax.random.split(key, 3)

    params = init_params(kp, n_categories, input_size, hidden_size, output_size)
    packed = pack_params(params, n_categories, input_size, hidden_size,
                         output_size, HP, OP)

    category = jax.nn.one_hot(
        jax.random.randint(kc, (batch,), 0, n_categories), n_categories,
        dtype=jnp.float32)
    input_seq = jax.nn.one_hot(
        jax.random.randint(ki, (seq_len, batch), 0, input_size), input_size,
        dtype=jnp.float32)
    hidden0 = jnp.zeros((batch, hidden_size), jnp.float32)

    out_seq, hid = rnn_forward_seq(
        category, input_seq, hidden0, packed,
        hidden_size=hidden_size, output_size=output_size)
    out_seq, hid = jax.block_until_ready((out_seq, hid))

    ref_out, ref_hid = rnn_forward_ref(category, input_seq, hidden0, params)

    assert out_seq.shape == (seq_len, batch, output_size)
    assert hid.shape == (batch, hidden_size)
    assert jnp.allclose(out_seq, ref_out, atol=1e-4, rtol=1e-4), (
        float(jnp.max(jnp.abs(out_seq - ref_out))))
    assert jnp.allclose(hid, ref_hid, atol=1e-4, rtol=1e-4), (
        float(jnp.max(jnp.abs(hid - ref_hid))))

    print("KERNEL_OK")
</pallas_src>

<mosaic_0001>
module attributes {stable_mosaic.version = 11 : i64} {
  func.func @_rnn_seq_kernel(%arg0: i32, %arg1: memref<8x8x256xf32, #tpu.memory_space<vmem>>, %arg2: memref<8x128xf32, #tpu.memory_space<vmem>>, %arg3: memref<128x256xf32, #tpu.memory_space<vmem>>, %arg4: memref<8x8x128xf32, #tpu.memory_space<vmem>>, %arg5: memref<8x128xf32, #tpu.memory_space<vmem>>) attributes {dimension_semantics = [#tpu.dimension_semantics<arbitrary>], iteration_bounds = array<i64: 1>, scalar_prefetch = 0 : i64, scratch_operands = 0 : i64, tpu.core_type = #tpu.core_type<tc>, window_params = [{transform_indices = @transform_0, window_bounds = array<i64: 8, 8, 256>}, {pipeline_mode = #tpu.pipeline_mode<synchronous>, transform_indices = @transform_1, window_bounds = array<i64: 8, 128>}, {pipeline_mode = #tpu.pipeline_mode<synchronous>, transform_indices = @transform_2, window_bounds = array<i64: 128, 256>}, {transform_indices = @transform_3, window_bounds = array<i64: 8, 8, 128>}, {pipeline_mode = #tpu.pipeline_mode<synchronous>, transform_indices = @transform_4, window_bounds = array<i64: 8, 128>}]} {
    %c0_i32 = arith.constant 0 : i32
    %0 = arith.cmpi eq, %arg0, %c0_i32 : i32
    %1 = arith.extui %0 : i1 to i32
    %c0_i32_0 = arith.constant 0 : i32
    %2 = arith.cmpi ne, %1, %c0_i32_0 : i32
    scf.if %2 {
      %c0_62 = arith.constant 0 : index
      %c0_63 = arith.constant 0 : index
      %174 = vector.load %arg2[%c0_62, %c0_63] : memref<8x128xf32, #tpu.memory_space<vmem>>, vector<8x128xf32>
      %c0_64 = arith.constant 0 : index
      %c0_65 = arith.constant 0 : index
      %175 = vector.load %arg5[%c0_64, %c0_65] : memref<8x128xf32, #tpu.memory_space<vmem>>, vector<8x128xf32>
      tpu.vector_store %arg5[%c0_64, %c0_65], %174 {strides = array<i32>} : memref<8x128xf32, #tpu.memory_space<vmem>>, vector<8x128xf32>,
    } else {
    }
    %c0 = arith.constant 0 : index
    %c0_1 = arith.constant 0 : index
    %3 = vector.load %arg3[%c0, %c0_1] : memref<128x256xf32, #tpu.memory_space<vmem>>, vector<128x256xf32>
    %c0_2 = arith.constant 0 : index
    %c0_3 = arith.constant 0 : index
    %4 = vector.load %arg5[%c0_2, %c0_3] : memref<8x128xf32, #tpu.memory_space<vmem>>, vector<8x128xf32>
    %c0_i32_4 = arith.constant 0 : i32
    %5 = arith.index_cast %c0_i32_4 : i32 to index
    %c0_5 = arith.constant 0 : index
    %c0_6 = arith.constant 0 : index
    %6 = vector.load %arg1[%5, %c0_5, %c0_6] : memref<8x8x256xf32, #tpu.memory_space<vmem>>, vector<1x8x256xf32>
    %7 = vector.shape_cast %6 : vector<1x8x256xf32> to vector<8x256xf32>
    %cst = arith.constant dense<0.000000e+00> : vector<8x256xf32>
    %8 = tpu.matmul %4, %3, %cst {dimension_numbers = #tpu.dot_dimension_numbers<[1], [0], [0], [1], [0, 0, 1, 1], [], []>} : vector<8x128xf32>, vector<128x256xf32>, vector<8x256xf32> -> vector<8x256xf32>
    %9 = arith.addf %7, %8 : vector<8x256xf32>
    %10 = vector.extract_strided_slice %9 {offsets = [0, 0], sizes = [8, 128], strides = [1, 1]} : vector<8x256xf32> to vector<8x128xf32>
    %11 = vector.extract_strided_slice %9 {offsets = [0, 128], sizes = [8, 128], strides = [1, 1]} : vector<8x256xf32> to vector<8x128xf32>
    %cst_7 = arith.constant dense<0xFF800000> : vector<8xf32>
    %12 = vector.multi_reduction <maximumf>, %11, %cst_7 [1] : vector<8x128xf32> to vector<8xf32>
    %13 = vector.shape_cast %12 : vector<8xf32> to vector<8x1xf32>
    %14 = vector.broadcast %13 : vector<8x1xf32> to vector<8x128xf32>
    %15 = arith.subf %11, %14 : vector<8x128xf32>
    %16 = math.exp %15 : vector<8x128xf32>
    %cst_8 = arith.constant dense<0.000000e+00> : vector<8xf32>
    %17 = vector.multi_reduction <add>, %16, %cst_8 [1] : vector<8x128xf32> to vector<8xf32>
    %18 = vector.shape_cast %17 : vector<8xf32> to vector<8x1xf32>
    %19 = math.log %18 : vector<8x1xf32>
    %20 = vector.broadcast %19 : vector<8x1xf32> to vector<8x128xf32>
    %21 = arith.subf %15, %20 : vector<8x128xf32>
    %22 = arith.index_cast %c0_i32_4 : i32 to index
    %c0_9 = arith.constant 0 : index
    %c0_10 = arith.constant 0 : index
    %23 = vector.load %arg4[%22, %c0_9, %c0_10] : memref<8x8x128xf32, #tpu.memory_space<vmem>>, vector<1x8x128xf32>
    %24 = vector.shape_cast %23 : vector<1x8x128xf32> to vector<8x128xf32>
    %25 = vector.shape_cast %21 : vector<8x128xf32> to vector<1x8x128xf32>
    tpu.vector_store %arg4[%22, %c0_9, %c0_10], %25 {strides = array<i32>} : memref<8x8x128xf32, #tpu.memory_space<vmem>>, vector<1x8x128xf32>,
    %c1_i32 = arith.constant 1 : i32
    %26 = arith.index_cast %c1_i32 : i32 to index
    %c0_11 = arith.constant 0 : index
    %c0_12 = arith.constant 0 : index
    %27 = vector.load %arg1[%26, %c0_11, %c0_12] : memref<8x8x256xf32, #tpu.memory_space<vmem>>, vector<1x8x256xf32>
    %28 = vector.shape_cast %27 : vector<1x8x256xf32> to vector<8x256xf32>
    %cst_13 = arith.constant dense<0.000000e+00> : vector<8x256xf32>
    %29 = tpu.matmul %10, %3, %cst_13 {dimension_numbers = #tpu.dot_dimension_numbers<[1], [0], [0], [1], [0, 0, 1, 1], [], []>} : vector<8x128xf32>, vector<128x256xf32>, vector<8x256xf32> -> vector<8x256xf32>
    %30 = arith.addf %28, %29 : vector<8x256xf32>
    %31 = vector.extract_strided_slice %30 {offsets = [0, 0], sizes = [8, 128], strides = [1, 1]} : vector<8x256xf32> to vector<8x128xf32>
    %32 = vector.extract_strided_slice %30 {offsets = [0, 128], sizes = [8, 128], strides = [1, 1]} : vector<8x256xf32> to vector<8x128xf32>
    %cst_14 = arith.constant dense<0xFF800000> : vector<8xf32>
    %33 = vector.multi_reduction <maximumf>, %32, %cst_14 [1] : vector<8x128xf32> to vector<8xf32>
    %34 = vector.shape_cast %33 : vector<8xf32> to vector<8x1xf32>
    %35 = vector.broadcast %34 : vector<8x1xf32> to vector<8x128xf32>
    %36 = arith.subf %32, %35 : vector<8x128xf32>
    %37 = math.exp %36 : vector<8x128xf32>
    %cst_15 = arith.constant dense<0.000000e+00> : vector<8xf32>
    %38 = vector.multi_reduction <add>, %37, %cst_15 [1] : vector<8x128xf32> to vector<8xf32>
    %39 = vector.shape_cast %38 : vector<8xf32> to vector<8x1xf32>
    %40 = math.log %39 : vector<8x1xf32>
    %41 = vector.broadcast %40 : vector<8x1xf32> to vector<8x128xf32>
    %42 = arith.subf %36, %41 : vector<8x128xf32>
    %43 = arith.index_cast %c1_i32 : i32 to index
    %c0_16 = arith.constant 0 : index
    %c0_17 = arith.constant 0 : index
    %44 = vector.load %arg4[%43, %c0_16, %c0_17] : memref<8x8x128xf32, #tpu.memory_space<vmem>>, vector<1x8x128xf32>
    %45 = vector.shape_cast %44 : vector<1x8x128xf32> to vector<8x128xf32>
    %46 = vector.shape_cast %42 : vector<8x128xf32> to vector<1x8x128xf32>
    tpu.vector_store %arg4[%43, %c0_16, %c0_17], %46 {strides = array<i32>} : memref<8x8x128xf32, #tpu.memory_space<vmem>>, vector<1x8x128xf32>,
    %c2_i32 = arith.constant 2 : i32
    %47 = arith.index_cast %c2_i32 : i32 to index
    %c0_18 = arith.constant 0 : index
    %c0_19 = arith.constant 0 : index
    %48 = vector.load %arg1[%47, %c0_18, %c0_19] : memref<8x8x256xf32, #tpu.memory_space<vmem>>, vector<1x8x256xf32>
    %49 = vector.shape_cast %48 : vector<1x8x256xf32> to vector<8x256xf32>
    %cst_20 = arith.constant dense<0.000000e+00> : vector<8x256xf32>
    %50 = tpu.matmul %31, %3, %cst_20 {dimension_numbers = #tpu.dot_dimension_numbers<[1], [0], [0], [1], [0, 0, 1, 1], [], []>} : vector<8x128xf32>, vector<128x256xf32>, vector<8x256xf32> -> vector<8x256xf32>
    %51 = arith.addf %49, %50 : vector<8x256xf32>
    %52 = vector.extract_strided_slice %51 {offsets = [0, 0], sizes = [8, 128], strides = [1, 1]} : vector<8x256xf32> to vector<8x128xf32>
    %53 = vector.extract_strided_slice %51 {offsets = [0, 128], sizes = [8, 128], strides = [1, 1]} : vector<8x256xf32> to vector<8x128xf32>
    %cst_21 = arith.constant dense<0xFF800000> : vector<8xf32>
    %54 = vector.multi_reduction <maximumf>, %53, %cst_21 [1] : vector<8x128xf32> to vector<8xf32>
    %55 = vector.shape_cast %54 : vector<8xf32> to vector<8x1xf32>
    %56 = vector.broadcast %55 : vector<8x1xf32> to vector<8x128xf32>
    %57 = arith.subf %53, %56 : vector<8x128xf32>
    %58 = math.exp %57 : vector<8x128xf32>
    %cst_22 = arith.constant dense<0.000000e+00> : vector<8xf32>
    %59 = vector.multi_reduction <add>, %58, %cst_22 [1] : vector<8x128xf32> to vector<8xf32>
    %60 = vector.shape_cast %59 : vector<8xf32> to vector<8x1xf32>
    %61 = math.log %60 : vector<8x1xf32>
    %62 = vector.broadcast %61 : vector<8x1xf32> to vector<8x128xf32>
    %63 = arith.subf %57, %62 : vector<8x128xf32>
    %64 = arith.index_cast %c2_i32 : i32 to index
    %c0_23 = arith.constant 0 : index
    %c0_24 = arith.constant 0 : index
    %65 = vector.load %arg4[%64, %c0_23, %c0_24] : memref<8x8x128xf32, #tpu.memory_space<vmem>>, vector<1x8x128xf32>
    %66 = vector.shape_cast %65 : vector<1x8x128xf32> to vector<8x128xf32>
    %67 = vector.shape_cast %63 : vector<8x128xf32> to vector<1x8x128xf32>
    tpu.vector_store %arg4[%64, %c0_23, %c0_24], %67 {strides = array<i32>} : memref<8x8x128xf32, #tpu.memory_space<vmem>>, vector<1x8x128xf32>,
    %c3_i32 = arith.constant 3 : i32
    %68 = arith.index_cast %c3_i32 : i32 to index
    %c0_25 = arith.constant 0 : index
    %c0_26 = arith.constant 0 : index
    %69 = vector.load %arg1[%68, %c0_25, %c0_26] : memref<8x8x256xf32, #tpu.memory_space<vmem>>, vector<1x8x256xf32>
    %70 = vector.shape_cast %69 : vector<1x8x256xf32> to vector<8x256xf32>
    %cst_27 = arith.constant dense<0.000000e+00> : vector<8x256xf32>
    %71 = tpu.matmul %52, %3, %cst_27 {dimension_numbers = #tpu.dot_dimension_numbers<[1], [0], [0], [1], [0, 0, 1, 1], [], []>} : vector<8x128xf32>, vector<128x256xf32>, vector<8x256xf32> -> vector<8x256xf32>
    %72 = arith.addf %70, %71 : vector<8x256xf32>
    %73 = vector.extract_strided_slice %72 {offsets = [0, 0], sizes = [8, 128], strides = [1, 1]} : vector<8x256xf32> to vector<8x128xf32>
    %74 = vector.extract_strided_slice %72 {offsets = [0, 128], sizes = [8, 128], strides = [1, 1]} : vector<8x256xf32> to vector<8x128xf32>
    %cst_28 = arith.constant dense<0xFF800000> : vector<8xf32>
    %75 = vector.multi_reduction <maximumf>, %74, %cst_28 [1] : vector<8x128xf32> to vector<8xf32>
    %76 = vector.shape_cast %75 : vector<8xf32> to vector<8x1xf32>
    %77 = vector.broadcast %76 : vector<8x1xf32> to vector<8x128xf32>
    %78 = arith.subf %74, %77 : vector<8x128xf32>
    %79 = math.exp %78 : vector<8x128xf32>
    %cst_29 = arith.constant dense<0.000000e+00> : vector<8xf32>
    %80 = vector.multi_reduction <add>, %79, %cst_29 [1] : vector<8x128xf32> to vector<8xf32>
    %81 = vector.shape_cast %80 : vector<8xf32> to vector<8x1xf32>
    %82 = math.log %81 : vector<8x1xf32>
    %83 = vector.broadcast %82 : vector<8x1xf32> to vector<8x128xf32>
    %84 = arith.subf %78, %83 : vector<8x128xf32>
    %85 = arith.index_cast %c3_i32 : i32 to index
    %c0_30 = arith.constant 0 : index
    %c0_31 = arith.constant 0 : index
    %86 = vector.load %arg4[%85, %c0_30, %c0_31] : memref<8x8x128xf32, #tpu.memory_space<vmem>>, vector<1x8x128xf32>
    %87 = vector.shape_cast %86 : vector<1x8x128xf32> to vector<8x128xf32>
    %88 = vector.shape_cast %84 : vector<8x128xf32> to vector<1x8x128xf32>
    tpu.vector_store %arg4[%85, %c0_30, %c0_31], %88 {strides = array<i32>} : memref<8x8x128xf32, #tpu.memory_space<vmem>>, vector<1x8x128xf32>,
    %c4_i32 = arith.constant 4 : i32
    %89 = arith.index_cast %c4_i32 : i32 to index
    %c0_32 = arith.constant 0 : index
    %c0_33 = arith.constant 0 : index
    %90 = vector.load %arg1[%89, %c0_32, %c0_33] : memref<8x8x256xf32, #tpu.memory_space<vmem>>, vector<1x8x256xf32>
    %91 = vector.shape_cast %90 : vector<1x8x256xf32> to vector<8x256xf32>
    %cst_34 = arith.constant dense<0.000000e+00> : vector<8x256xf32>
    %92 = tpu.matmul %73, %3, %cst_34 {dimension_numbers = #tpu.dot_dimension_numbers<[1], [0], [0], [1], [0, 0, 1, 1], [], []>} : vector<8x128xf32>, vector<128x256xf32>, vector<8x256xf32> -> vector<8x256xf32>
    %93 = arith.addf %91, %92 : vector<8x256xf32>
    %94 = vector.extract_strided_slice %93 {offsets = [0, 0], sizes = [8, 128], strides = [1, 1]} : vector<8x256xf32> to vector<8x128xf32>
    %95 = vector.extract_strided_slice %93 {offsets = [0, 128], sizes = [8, 128], strides = [1, 1]} : vector<8x256xf32> to vector<8x128xf32>
    %cst_35 = arith.constant dense<0xFF800000> : vector<8xf32>
    %96 = vector.multi_reduction <maximumf>, %95, %cst_35 [1] : vector<8x128xf32> to vector<8xf32>
    %97 = vector.shape_cast %96 : vector<8xf32> to vector<8x1xf32>
    %98 = vector.broadcast %97 : vector<8x1xf32> to vector<8x128xf32>
    %99 = arith.subf %95, %98 : vector<8x128xf32>
    %100 = math.exp %99 : vector<8x128xf32>
    %cst_36 = arith.constant dense<0.000000e+00> : vector<8xf32>
    %101 = vector.multi_reduction <add>, %100, %cst_36 [1] : vector<8x128xf32> to vector<8xf32>
    %102 = vector.shape_cast %101 : vector<8xf32> to vector<8x1xf32>
    %103 = math.log %102 : vector<8x1xf32>
    %104 = vector.broadcast %103 : vector<8x1xf32> to vector<8x128xf32>
    %105 = arith.subf %99, %104 : vector<8x128xf32>
    %106 = arith.index_cast %c4_i32 : i32 to index
    %c0_37 = arith.constant 0 : index
    %c0_38 = arith.constant 0 : index
    %107 = vector.load %arg4[%106, %c0_37, %c0_38] : memref<8x8x128xf32, #tpu.memory_space<vmem>>, vector<1x8x128xf32>
    %108 = vector.shape_cast %107 : vector<1x8x128xf32> to vector<8x128xf32>
    %109 = vector.shape_cast %105 : vector<8x128xf32> to vector<1x8x128xf32>
    tpu.vector_store %arg4[%106, %c0_37, %c0_38], %109 {strides = array<i32>} : memref<8x8x128xf32, #tpu.memory_space<vmem>>, vector<1x8x128xf32>,
    %c5_i32 = arith.constant 5 : i32
    %110 = arith.index_cast %c5_i32 : i32 to index
    %c0_39 = arith.constant 0 : index
    %c0_40 = arith.constant 0 : index
    %111 = vector.load %arg1[%110, %c0_39, %c0_40] : memref<8x8x256xf32, #tpu.memory_space<vmem>>, vector<1x8x256xf32>
    %112 = vector.shape_cast %111 : vector<1x8x256xf32> to vector<8x256xf32>
    %cst_41 = arith.constant dense<0.000000e+00> : vector<8x256xf32>
    %113 = tpu.matmul %94, %3, %cst_41 {dimension_numbers = #tpu.dot_dimension_numbers<[1], [0], [0], [1], [0, 0, 1, 1], [], []>} : vector<8x128xf32>, vector<128x256xf32>, vector<8x256xf32> -> vector<8x256xf32>
    %114 = arith.addf %112, %113 : vector<8x256xf32>
    %115 = vector.extract_strided_slice %114 {offsets = [0, 0], sizes = [8, 128], strides = [1, 1]} : vector<8x256xf32> to vector<8x128xf32>
    %116 = vector.extract_strided_slice %114 {offsets = [0, 128], sizes = [8, 128], strides = [1, 1]} : vector<8x256xf32> to vector<8x128xf32>
    %cst_42 = arith.constant dense<0xFF800000> : vector<8xf32>
    %117 = vector.multi_reduction <maximumf>, %116, %cst_42 [1] : vector<8x128xf32> to vector<8xf32>
    %118 = vector.shape_cast %117 : vector<8xf32> to vector<8x1xf32>
    %119 = vector.broadcast %118 : vector<8x1xf32> to vector<8x128xf32>
    %120 = arith.subf %116, %119 : vector<8x128xf32>
    %121 = math.exp %120 : vector<8x128xf32>
    %cst_43 = arith.constant dense<0.000000e+00> : vector<8xf32>
    %122 = vector.multi_reduction <add>, %121, %cst_43 [1] : vector<8x128xf32> to vector<8xf32>
    %123 = vector.shape_cast %122 : vector<8xf32> to vector<8x1xf32>
    %124 = math.log %123 : vector<8x1xf32>
    %125 = vector.broadcast %124 : vector<8x1xf32> to vector<8x128xf32>
    %126 = arith.subf %120, %125 : vector<8x128xf32>
    %127 = arith.index_cast %c5_i32 : i32 to index
    %c0_44 = arith.constant 0 : index
    %c0_45 = arith.constant 0 : index
    %128 = vector.load %arg4[%127, %c0_44, %c0_45] : memref<8x8x128xf32, #tpu.memory_space<vmem>>, vector<1x8x128xf32>
    %129 = vector.shape_cast %128 : vector<1x8x128xf32> to vector<8x128xf32>
    %130 = vector.shape_cast %126 : vector<8x128xf32> to vector<1x8x128xf32>
    tpu.vector_store %arg4[%127, %c0_44, %c0_45], %130 {strides = array<i32>} : memref<8x8x128xf32, #tpu.memory_space<vmem>>, vector<1x8x128xf32>,
    %c6_i32 = arith.constant 6 : i32
    %131 = arith.index_cast %c6_i32 : i32 to index
    %c0_46 = arith.constant 0 : index
    %c0_47 = arith.constant 0 : index
    %132 = vector.load %arg1[%131, %c0_46, %c0_47] : memref<8x8x256xf32, #tpu.memory_space<vmem>>, vector<1x8x256xf32>
    %133 = vector.shape_cast %132 : vector<1x8x256xf32> to vector<8x256xf32>
    %cst_48 = arith.constant dense<0.000000e+00> : vector<8x256xf32>
    %134 = tpu.matmul %115, %3, %cst_48 {dimension_numbers = #tpu.dot_dimension_numbers<[1], [0], [0], [1], [0, 0, 1, 1], [], []>} : vector<8x128xf32>, vector<128x256xf32>, vector<8x256xf32> -> vector<8x256xf32>
    %135 = arith.addf %133, %134 : vector<8x256xf32>
    %136 = vector.extract_strided_slice %135 {offsets = [0, 0], sizes = [8, 128], strides = [1, 1]} : vector<8x256xf32> to vector<8x128xf32>
    %137 = vector.extract_strided_slice %135 {offsets = [0, 128], sizes = [8, 128], strides = [1, 1]} : vector<8x256xf32> to vector<8x128xf32>
    %cst_49 = arith.constant dense<0xFF800000> : vector<8xf32>
    %138 = vector.multi_reduction <maximumf>, %137, %cst_49 [1] : vector<8x128xf32> to vector<8xf32>
    %139 = vector.shape_cast %138 : vector<8xf32> to vector<8x1xf32>
    %140 = vector.broadcast %139 : vector<8x1xf32> to vector<8x128xf32>
    %141 = arith.subf %137, %140 : vector<8x128xf32>
    %142 = math.exp %141 : vector<8x128xf32>
    %cst_50 = arith.constant dense<0.000000e+00> : vector<8xf32>
    %143 = vector.multi_reduction <add>, %142, %cst_50 [1] : vector<8x128xf32> to vector<8xf32>
    %144 = vector.shape_cast %143 : vector<8xf32> to vector<8x1xf32>
    %145 = math.log %144 : vector<8x1xf32>
    %146 = vector.broadcast %145 : vector<8x1xf32> to vector<8x128xf32>
    %147 = arith.subf %141, %146 : vector<8x128xf32>
    %148 = arith.index_cast %c6_i32 : i32 to index
    %c0_51 = arith.constant 0 : index
    %c0_52 = arith.constant 0 : index
    %149 = vector.load %arg4[%148, %c0_51, %c0_52] : memref<8x8x128xf32, #tpu.memory_space<vmem>>, vector<1x8x128xf32>
    %150 = vector.shape_cast %149 : vector<1x8x128xf32> to vector<8x128xf32>
    %151 = vector.shape_cast %147 : vector<8x128xf32> to vector<1x8x128xf32>
    tpu.vector_store %arg4[%148, %c0_51, %c0_52], %151 {strides = array<i32>} : memref<8x8x128xf32, #tpu.memory_space<vmem>>, vector<1x8x128xf32>,
    %c7_i32 = arith.constant 7 : i32
    %152 = arith.index_cast %c7_i32 : i32 to index
    %c0_53 = arith.constant 0 : index
    %c0_54 = arith.constant 0 : index
    %153 = vector.load %arg1[%152, %c0_53, %c0_54] : memref<8x8x256xf32, #tpu.memory_space<vmem>>, vector<1x8x256xf32>
    %154 = vector.shape_cast %153 : vector<1x8x256xf32> to vector<8x256xf32>
    %cst_55 = arith.constant dense<0.000000e+00> : vector<8x256xf32>
    %155 = tpu.matmul %136, %3, %cst_55 {dimension_numbers = #tpu.dot_dimension_numbers<[1], [0], [0], [1], [0, 0, 1, 1], [], []>} : vector<8x128xf32>, vector<128x256xf32>, vector<8x256xf32> -> vector<8x256xf32>
    %156 = arith.addf %154, %155 : vector<8x256xf32>
    %157 = vector.extract_strided_slice %156 {offsets = [0, 0], sizes = [8, 128], strides = [1, 1]} : vector<8x256xf32> to vector<8x128xf32>
    %158 = vector.extract_strided_slice %156 {offsets = [0, 128], sizes = [8, 128], strides = [1, 1]} : vector<8x256xf32> to vector<8x128xf32>
    %cst_56 = arith.constant dense<0xFF800000> : vector<8xf32>
    %159 = vector.multi_reduction <maximumf>, %158, %cst_56 [1] : vector<8x128xf32> to vector<8xf32>
    %160 = vector.shape_cast %159 : vector<8xf32> to vector<8x1xf32>
    %161 = vector.broadcast %160 : vector<8x1xf32> to vector<8x128xf32>
    %162 = arith.subf %158, %161 : vector<8x128xf32>
    %163 = math.exp %162 : vector<8x128xf32>
    %cst_57 = arith.constant dense<0.000000e+00> : vector<8xf32>
    %164 = vector.multi_reduction <add>, %163, %cst_57 [1] : vector<8x128xf32> to vector<8xf32>
    %165 = vector.shape_cast %164 : vector<8xf32> to vector<8x1xf32>
    %166 = math.log %165 : vector<8x1xf32>
    %167 = vector.broadcast %166 : vector<8x1xf32> to vector<8x128xf32>
    %168 = arith.subf %162, %167 : vector<8x128xf32>
    %169 = arith.index_cast %c7_i32 : i32 to index
    %c0_58 = arith.constant 0 : index
    %c0_59 = arith.constant 0 : index
    %170 = vector.load %arg4[%169, %c0_58, %c0_59] : memref<8x8x128xf32, #tpu.memory_space<vmem>>, vector<1x8x128xf32>
    %171 = vector.shape_cast %170 : vector<1x8x128xf32> to vector<8x128xf32>
    %172 = vector.shape_cast %168 : vector<8x128xf32> to vector<1x8x128xf32>
    tpu.vector_store %arg4[%169, %c0_58, %c0_59], %172 {strides = array<i32>} : memref<8x8x128xf32, #tpu.memory_space<vmem>>, vector<1x8x128xf32>,
    %c8_i32 = arith.constant 8 : i32
    %c0_60 = arith.constant 0 : index
    %c0_61 = arith.constant 0 : index
    %173 = vector.load %arg5[%c0_60, %c0_61] : memref<8x128xf32, #tpu.memory_space<vmem>>, vector<8x128xf32>
    tpu.vector_store %arg5[%c0_60, %c0_61], %157 {strides = array<i32>} : memref<8x128xf32, #tpu.memory_space<vmem>>, vector<8x128xf32>,
    return
  }
  func.func @transform_0(%arg0: i32) -> (i32, i32, i32) {
    %c0_i32 = arith.constant 0 : i32
    %c0_i32_0 = arith.constant 0 : i32
    %c0_i32_1 = arith.constant 0 : i32
    return %arg0, %c0_i32, %c0_i32_0 : i32, i32, i32
  }
  func.func @transform_1(%arg0: i32) -> (i32, i32) {
    %c0_i32 = arith.constant 0 : i32
    %c0_i32_0 = arith.constant 0 : i32
    %c0_i32_1 = arith.constant 0 : i32
    return %c0_i32, %c0_i32_0 : i32, i32
  }
  func.func @transform_2(%arg0: i32) -> (i32, i32) {
    %c0_i32 = arith.constant 0 : i32
    %c0_i32_0 = arith.constant 0 : i32
    %c0_i32_1 = arith.constant 0 : i32
    return %c0_i32, %c0_i32_0 : i32, i32
  }
  func.func @transform_3(%arg0: i32) -> (i32, i32, i32) {
    %c0_i32 = arith.constant 0 : i32
    %c0_i32_0 = arith.constant 0 : i32
    %c0_i32_1 = arith.constant 0 : i32
    return %arg0, %c0_i32, %c0_i32_0 : i32, i32, i32
  }
  func.func @transform_4(%arg0: i32) -> (i32, i32) {
    %c0_i32 = arith.constant 0 : i32
    %c0_i32_0 = arith.constant 0 : i32
    %c0_i32_1 = arith.constant 0 : i32
    return %c0_i32, %c0_i32_0 : i32, i32
  }
}

</mosaic_0001>

<bundles_post_ra>
// kernel: tpu_custom_call.1
= control target key start
LH: loop header
LB: loop body
LE: loop exit
PB: predicated region body
PF: predicated region fallthrough
CT: control target
= control target key end

     0   :  { %10 = vsyncpa [#allocation3], 0  ;;  %s1151_s0 = inlined_call_operand.hbm [shape: f32[8,8,256], index: 0, kind: input, shape index: {}]   ;;  %s1152_s1 = inlined_call_operand.hbm [shape: f32[8,128], index: 1, kind: input, shape index: {}]   ;;  %s1153_s2 = inlined_call_operand.hbm [shape: f32[128,256], index: 2, kind: input, shape index: {}]   ;;  %s1154_s3 = inlined_call_operand.hbm [shape: f32[8,8,128], index: 3, kind: output, shape index: {0}]   ;;  %s1155_s4 = inlined_call_operand.hbm [shape: f32[8,128], index: 4, kind: output, shape index: {1}]  }
   0x1   :  { %11 = vsyncpa [#allocation6], 0 }
   0x2   :  { %12 = vsyncpa [#allocation4], 0  ;;  %s32_s17 = sshll.u32 %s1152_s1, 4  ;;  %s33_s17 = int_to_ptr.hbm [resolvable:$true] %s32_s17 }
   0x3   :  { %13 = vsyncpa [#allocation10], 0  ;;  %s762_s18 = smov [#allocation5]   ;;  %s18_s22 = sshll.u32 %s1151_s0, 4  ;;  %s19_s22 = int_to_ptr.hbm [resolvable:$true] %s18_s22 }
   0x4   :  { %s34_s19 = sshll.u32 %s762_s18, 4  ;;  %s763_s23 = smov [#allocation2]   ;;  %s35_s19 = int_to_ptr.vmem [resolvable:$true] %s34_s19 }
   0x5   :  { %37 = dma.hbm_to_vmem [thread:$0]  %s33_s17, 128, %s35_s19, [#allocation6]  }
   0x6   :  { %s20_s24 = sshll.u32 %s763_s23, 4  ;;  %s764_s25 = smov 256   ;;  %s21_s24 = int_to_ptr.vmem [resolvable:$true] %s20_s24 }
   0x7   :  { %s765_s26 = smov 16   ;;  %s42_s1 = sshll.u32 %s1153_s2, 4  ;;  %s43_s1 = int_to_ptr.hbm [resolvable:$true] %s42_s1 }
   0x8   :  { %26 = dma.hbm_to_vmem [thread:$0]  %s19_s22, 2048, %s21_s24, [#allocation3], %s764_s25, %s764_s25, %s765_s26  }
   0x9   :  { %s766_s29 = smov [#allocation7]  }
   0xa   :  { %s44_s30 = sshll.u32 %s766_s29, 4  ;;  %s45_s30 = int_to_ptr.vmem [resolvable:$true] %s44_s30 }
   0xb   :  { %50 = dma.hbm_to_vmem [thread:$0]  %s43_s1, 4096, %s45_s30, [#allocation6], %s764_s25, %s764_s25, %s765_s26  }
   0xc   :  { %754 = dma.done.wait [#allocation3], 2048  }
   0xd   :  { %755 = vsyncadd [#allocation3], 4294965248 }
   0xe   :  { %756 = dma.done.wait [#allocation6], 4224  }
   0xf   :  { %757 = vsyncadd [#allocation6], 4294963072  ;;  %v805_v0 = vld [vmem:[#allocation7 + $0xf0] sm:$0xff]  ;;  %v807_v1 = vld [vmem:[#allocation7 + $0xe0] sm:$0xff]  ;;  %s767_s0 = smov [#allocation9]   ;;  %s577_s7 = sshll.u32 %s1155_s4, 4  ;;  %s578_s7 = int_to_ptr.hbm [resolvable:$true] %s577_s7 }
  0x10   :  { %104 = vmatpush.msra.mxu0 %v805_v0  ;;  %160 = vmatpush.msra.mxu2 %v805_v0  ;;  %v811_v2 = vld [vmem:[#allocation7 + $0xd0] sm:$0xff]  ;;  %v815_v3 = vld [vmem:[#allocation7 + $0xc0] sm:$0xff]  ;;  %v818_v4 = vld [vmem:[#allocation7 + $0xf8] sm:$0xff]  ;;  %s575_s2 = sshll.u32 %s767_s0, 4  ;;  %s768_s8 = smov [#allocation8]   ;;  %s576_s2 = int_to_ptr.vmem [resolvable:$true] %s575_s2 }
  0x11   :  { %v821_v5 = vld [vmem:[#allocation7 + $0xb0] sm:$0xff]  ;;  %124 = vmatpush.msra.mxu1 %v818_v4  ;;  %v824_v6 = vld [vmem:[#allocation7 + $0xe8] sm:$0xff]  ;;  %180 = vmatpush.msra.mxu3 %v818_v4  ;;  %v828_v7 = vld [vmem:[#allocation7 + $0xd8] sm:$0xff]  ;;  %s561_s9 = sshll.u32 %s768_s8, 4  ;;  %s563_s4 = sshll.u32 %s1154_s3, 4  ;;  %s562_s9 = int_to_ptr.vmem [resolvable:$true] %s561_s9  ;;  %s564_s4 = int_to_ptr.hbm [resolvable:$true] %s563_s4 }
  0x12   :  { %105 = vmatpush.msra.mxu0 %v807_v1  ;;  %161 = vmatpush.msra.mxu2 %v807_v1  ;;  %v831_v8 = vld [vmem:[#allocation7 + $0xa0] sm:$0xff]  ;;  %v836_v9 = vld [vmem:[#allocation7 + $0xc8] sm:$0xff]  ;;  %v839_v10 = vld [vmem:[#allocation7 + $0x90] sm:$0xff]  ;;  %s769_s12 = smov 128   ;;  %s770_s13 = smov 8  }
  0x13   :  { %125 = vmatpush.msra.mxu1 %v824_v6  ;;  %181 = vmatpush.msra.mxu3 %v824_v6  ;;  %v844_v11 = vld [vmem:[#allocation7 + $0xb8] sm:$0xff]  ;;  %v847_v12 = vld [vmem:[#allocation7 + $0x80] sm:$0xff]  ;;  %v852_v13 = vld [vmem:[#allocation7 + $0xa8] sm:$0xff] }
  0x14   :  { %106 = vmatpush.msra.mxu0 %v811_v2  ;;  %162 = vmatpush.msra.mxu2 %v811_v2  ;;  %v855_v14 = vld [vmem:[#allocation7 + $0x70] sm:$0xff]  ;;  %v860_v15 = vld [vmem:[#allocation7 + $0x98] sm:$0xff]  ;;  %v863_v16 = vld [vmem:[#allocation7 + $0x60] sm:$0xff] }
  0x15   :  { %126 = vmatpush.msra.mxu1 %v828_v7  ;;  %182 = vmatpush.msra.mxu3 %v828_v7  ;;  %v868_v17 = vld [vmem:[#allocation7 + $0x88] sm:$0xff]  ;;  %v871_v18 = vld [vmem:[#allocation7 + $0x50] sm:$0xff]  ;;  %v876_v19 = vld [vmem:[#allocation7 + $0x78] sm:$0xff] }
  0x16   :  { %107 = vmatpush.msra.mxu0 %v815_v3  ;;  %163 = vmatpush.msra.mxu2 %v815_v3  ;;  %v879_v20 = vld [vmem:[#allocation7 + $0x40] sm:$0xff]  ;;  %v884_v21 = vld [vmem:[#allocation7 + $0x68] sm:$0xff]  ;;  %v887_v22 = vld [vmem:[#allocation7 + $0x30] sm:$0xff] }
  0x17   :  { %127 = vmatpush.msra.mxu1 %v836_v9  ;;  %183 = vmatpush.msra.mxu3 %v836_v9  ;;  %v892_v23 = vld [vmem:[#allocation7 + $0x58] sm:$0xff]  ;;  %v895_v24 = vld [vmem:[#allocation7 + $0x20] sm:$0xff]  ;;  %v900_v25 = vld [vmem:[#allocation7 + $0x48] sm:$0xff] }
  0x18   :  { %108 = vmatpush.msra.mxu0 %v821_v5  ;;  %164 = vmatpush.msra.mxu2 %v821_v5  ;;  %v903_v26 = vld [vmem:[#allocation7 + $0x10] sm:$0xff]  ;;  %v908_v27 = vld [vmem:[#allocation7 + $0x38] sm:$0xff]  ;;  %v911_v28 = vld [vmem:[#allocation7] sm:$0xff] }
  0x19   :  { %128 = vmatpush.msra.mxu1 %v844_v11  ;;  %184 = vmatpush.msra.mxu3 %v844_v11  ;;  %v916_v29 = vld [vmem:[#allocation5] sm:$0xff]  ;;  %v918_v30 = vld [vmem:[#allocation7 + $0x28] sm:$0xff]  ;;  %v103_v36 = vld [vmem:[#allocation2 + $0x8] sm:$0xff] }
  0x1a   :  { %109 = vmatpush.msra.mxu0 %v831_v8  ;;  %165 = vmatpush.msra.mxu2 %v831_v8  ;;  %v924_v31 = vld [vmem:[#allocation7 + $0x18] sm:$0xff]  ;;  %v980_v32 = vld [vmem:[#allocation7 + $0x8] sm:$0xff]  ;;  %v159_v40 = vld [vmem:[#allocation2 + $0x18] sm:$0xff] }
  0x1b   :  { %129 = vmatpush.msra.mxu1 %v852_v13  ;;  %185 = vmatpush.msra.mxu3 %v852_v13  ;;  %v102_v33 = vld [vmem:[#allocation2] sm:$0xff]  ;;  %v158_v39 = vld [vmem:[#allocation2 + $0x10] sm:$0xff]  ;;  %v216_v46 = vld [vmem:[#allocation2 + $0x28] sm:$0xff] }
  0x1c   :  { %110 = vmatpush.msra.mxu0 %v839_v10  ;;  %166 = vmatpush.msra.mxu2 %v839_v10  ;;  %v215_v45 = vld [vmem:[#allocation2 + $0x20] sm:$0xff]  ;;  %v272_v51 = vld [vmem:[#allocation2 + $0x30] sm:$0xff]  ;;  %v273_v52 = vld [vmem:[#allocation2 + $0x38] sm:$0xff] }
  0x1d   :  { %130 = vmatpush.msra.mxu1 %v860_v15  ;;  %186 = vmatpush.msra.mxu3 %v860_v15  ;;  %v329_v57 = vld [vmem:[#allocation2 + $0x40] sm:$0xff]  ;;  %v330_v58 = vld [vmem:[#allocation2 + $0x48] sm:$0xff] }
  0x1e   :  { %111 = vmatpush.msra.mxu0 %v847_v12  ;;  %167 = vmatpush.msra.mxu2 %v847_v12 }
  0x1f   :  { %131 = vmatpush.msra.mxu1 %v868_v17  ;;  %187 = vmatpush.msra.mxu3 %v868_v17 }
  0x20   :  { %112 = vmatpush.msra.mxu0 %v855_v14  ;;  %168 = vmatpush.msra.mxu2 %v855_v14 }
  0x21   :  { %132 = vmatpush.msra.mxu1 %v876_v19  ;;  %188 = vmatpush.msra.mxu3 %v876_v19 }
  0x22   :  { %113 = vmatpush.msra.mxu0 %v863_v16  ;;  %169 = vmatpush.msra.mxu2 %v863_v16 }
  0x23   :  { %133 = vmatpush.msra.mxu1 %v884_v21  ;;  %189 = vmatpush.msra.mxu3 %v884_v21 }
  0x24   :  { %114 = vmatpush.msra.mxu0 %v871_v18  ;;  %170 = vmatpush.msra.mxu2 %v871_v18 }
  0x25   :  { %134 = vmatpush.msra.mxu1 %v892_v23  ;;  %190 = vmatpush.msra.mxu3 %v892_v23 }
  0x26   :  { %115 = vmatpush.msra.mxu0 %v879_v20  ;;  %171 = vmatpush.msra.mxu2 %v879_v20 }
  0x27   :  { %135 = vmatpush.msra.mxu1 %v900_v25  ;;  %191 = vmatpush.msra.mxu3 %v900_v25 }
  0x28   :  { %116 = vmatpush.msra.mxu0 %v887_v22  ;;  %172 = vmatpush.msra.mxu2 %v887_v22 }
  0x29   :  { %136 = vmatpush.msra.mxu1 %v908_v27  ;;  %192 = vmatpush.msra.mxu3 %v908_v27 }
  0x2a   :  { %117 = vmatpush.msra.mxu0 %v895_v24  ;;  %173 = vmatpush.msra.mxu2 %v895_v24 }
  0x2b   :  { %137 = vmatpush.msra.mxu1 %v918_v30  ;;  %193 = vmatpush.msra.mxu3 %v918_v30 }
  0x2c   :  { %118 = vmatpush.msra.mxu0 %v903_v26  ;;  %174 = vmatpush.msra.mxu2 %v903_v26 }
  0x2d   :  { %138 = vmatpush.msra.mxu1 %v924_v31  ;;  %194 = vmatpush.msra.mxu3 %v924_v31 }
  0x2e   :  { %119 = vmatpush.msra.mxu0 %v911_v28  ;;  %175 = vmatpush.msra.mxu2 %v911_v28 }
  0x2f   :  { %120 = vmatmul.f32.vlgmr.msra.gmra.mxu0 %v916_v29  ;;  %139 = vmatpush.msra.mxu1 %v980_v32 }
  0x30   :  { %217 = vmatpush.msrb.mxu0 %v805_v0  ;;  %274 = vmatpush.msrb.mxu2 %v805_v0 }
  0x31   :  { %195 = vmatpush.msra.mxu3 %v980_v32  ;;  %140 = vmatmul.f32.vlgmr.msra.gmra.mxu1 %v916_v29 }
  0x32   :  { %218 = vmatpush.msrb.mxu0 %v807_v1  ;;  %275 = vmatpush.msrb.mxu2 %v807_v1 }
  0x33   :  { %294 = vmatpush.msrb.mxu3 %v818_v4  ;;  %237 = vmatpush.msrb.mxu1 %v818_v4 }
  0x34   :  { %219 = vmatpush.msrb.mxu0 %v811_v2  ;;  %276 = vmatpush.msrb.mxu2 %v811_v2 }
  0x35   :  { %295 = vmatpush.msrb.mxu3 %v824_v6  ;;  %238 = vmatpush.msrb.mxu1 %v824_v6 }
  0x36   :  { %220 = vmatpush.msrb.mxu0 %v815_v3  ;;  %277 = vmatpush.msrb.mxu2 %v815_v3 }
  0x37   :  { %296 = vmatpush.msrb.mxu3 %v828_v7  ;;  %239 = vmatpush.msrb.mxu1 %v828_v7 }
  0x38   :  { %221 = vmatpush.msrb.mxu0 %v821_v5  ;;  %278 = vmatpush.msrb.mxu2 %v821_v5 }
  0x39   :  { %297 = vmatpush.msrb.mxu3 %v836_v9  ;;  %240 = vmatpush.msrb.mxu1 %v836_v9 }
  0x3a   :  { %222 = vmatpush.msrb.mxu0 %v831_v8  ;;  %279 = vmatpush.msrb.mxu2 %v831_v8 }
  0x3b   :  { %298 = vmatpush.msrb.mxu3 %v844_v11  ;;  %241 = vmatpush.msrb.mxu1 %v844_v11 }
  0x3c   :  { %223 = vmatpush.msrb.mxu0 %v839_v10  ;;  %280 = vmatpush.msrb.mxu2 %v839_v10 }
  0x3d   :  { %299 = vmatpush.msrb.mxu3 %v852_v13  ;;  %242 = vmatpush.msrb.mxu1 %v852_v13 }
  0x3e   :  { %224 = vmatpush.msrb.mxu0 %v847_v12  ;;  %281 = vmatpush.msrb.mxu2 %v847_v12 }
  0x3f   :  { %300 = vmatpush.msrb.mxu3 %v860_v15  ;;  %243 = vmatpush.msrb.mxu1 %v860_v15 }
  0x40   :  { %225 = vmatpush.msrb.mxu0 %v855_v14  ;;  %282 = vmatpush.msrb.mxu2 %v855_v14 }
  0x41   :  { %301 = vmatpush.msrb.mxu3 %v868_v17  ;;  %244 = vmatpush.msrb.mxu1 %v868_v17 }
  0x42   :  { %226 = vmatpush.msrb.mxu0 %v863_v16  ;;  %283 = vmatpush.msrb.mxu2 %v863_v16 }
  0x43   :  { %302 = vmatpush.msrb.mxu3 %v876_v19  ;;  %245 = vmatpush.msrb.mxu1 %v876_v19 }
  0x44   :  { %227 = vmatpush.msrb.mxu0 %v871_v18  ;;  %284 = vmatpush.msrb.mxu2 %v871_v18 }
  0x45   :  { %303 = vmatpush.msrb.mxu3 %v884_v21  ;;  %246 = vmatpush.msrb.mxu1 %v884_v21 }
  0x46   :  { %228 = vmatpush.msrb.mxu0 %v879_v20  ;;  %285 = vmatpush.msrb.mxu2 %v879_v20 }
  0x47   :  { %304 = vmatpush.msrb.mxu3 %v892_v23  ;;  %247 = vmatpush.msrb.mxu1 %v892_v23 }
  0x48   :  { %229 = vmatpush.msrb.mxu0 %v887_v22  ;;  %286 = vmatpush.msrb.mxu2 %v887_v22 }
  0x49   :  { %305 = vmatpush.msrb.mxu3 %v900_v25  ;;  %248 = vmatpush.msrb.mxu1 %v900_v25 }
  0x4a   :  { %230 = vmatpush.msrb.mxu0 %v895_v24  ;;  %287 = vmatpush.msrb.mxu2 %v895_v24 }
  0x4b   :  { %306 = vmatpush.msrb.mxu3 %v908_v27  ;;  %249 = vmatpush.msrb.mxu1 %v908_v27 }
  0x4c   :  { %231 = vmatpush.msrb.mxu0 %v903_v26  ;;  %288 = vmatpush.msrb.mxu2 %v903_v26 }
  0x4d   :  { %307 = vmatpush.msrb.mxu3 %v918_v30  ;;  %250 = vmatpush.msrb.mxu1 %v918_v30 }
  0x4e   :  { %232 = vmatpush.msrb.mxu0 %v911_v28  ;;  %289 = vmatpush.msrb.mxu2 %v911_v28 }
  0x4f   :  { %308 = vmatpush.msrb.mxu3 %v924_v31  ;;  %251 = vmatpush.msrb.mxu1 %v924_v31 }
  0x50   :  { %331 = vmatpush.msra.mxu0 %v805_v0 }
  0x51   :  { %309 = vmatpush.msrb.mxu3 %v980_v32  ;;  %252 = vmatpush.msrb.mxu1 %v980_v32 }
  0x52   :  { %332 = vmatpush.msra.mxu0 %v807_v1 }
  0x53   :  { %351 = vmatpush.msra.mxu1 %v818_v4 }
  0x54   :  { %333 = vmatpush.msra.mxu0 %v811_v2 }
  0x55   :  { %352 = vmatpush.msra.mxu1 %v824_v6 }
  0x56   :  { %334 = vmatpush.msra.mxu0 %v815_v3 }
  0x57   :  { %353 = vmatpush.msra.mxu1 %v828_v7 }
  0x58   :  { %335 = vmatpush.msra.mxu0 %v821_v5 }
  0x59   :  { %354 = vmatpush.msra.mxu1 %v836_v9 }
  0x5a   :  { %336 = vmatpush.msra.mxu0 %v831_v8 }
  0x5b   :  { %355 = vmatpush.msra.mxu1 %v844_v11 }
  0x5c   :  { %337 = vmatpush.msra.mxu0 %v839_v10 }
  0x5d   :  { %356 = vmatpush.msra.mxu1 %v852_v13 }
  0x5e   :  { %338 = vmatpush.msra.mxu0 %v847_v12 }
  0x5f   :  { %357 = vmatpush.msra.mxu1 %v860_v15 }
  0x60   :  { %339 = vmatpush.msra.mxu0 %v855_v14 }
  0x61   :  { %358 = vmatpush.msra.mxu1 %v868_v17 }
  0x62   :  { %340 = vmatpush.msra.mxu0 %v863_v16 }
  0x63   :  { %359 = vmatpush.msra.mxu1 %v876_v19 }
  0x64   :  { %341 = vmatpush.msra.mxu0 %v871_v18 }
  0x65   :  { %360 = vmatpush.msra.mxu1 %v884_v21 }
  0x66   :  { %342 = vmatpush.msra.mxu0 %v879_v20 }
  0x67   :  { %361 = vmatpush.msra.mxu1 %v892_v23 }
  0x68   :  { %343 = vmatpush.msra.mxu0 %v887_v22 }
  0x69   :  { %362 = vmatpush.msra.mxu1 %v900_v25 }
  0x6a   :  { %344 = vmatpush.msra.mxu0 %v895_v24 }
  0x6b   :  { %363 = vmatpush.msra.mxu1 %v908_v27 }
  0x6c   :  { %345 = vmatpush.msra.mxu0 %v903_v26 }
  0x6d   :  { %364 = vmatpush.msra.mxu1 %v918_v30 }
  0x6e   :  { %346 = vmatpush.msra.mxu0 %v911_v28 }
  0x6f   :  { %365 = vmatpush.msra.mxu1 %v924_v31 }
  0x71   :  { %366 = vmatpush.msra.mxu1 %v980_v32 }
  0xac   :  { %v121_v34 = vpop.f32.mrf.mxu0 }
  0xad   :  { %v144_v35 = vadd.f32 %v121_v34, %v102_v33 }
  0xae   :  { %v141_v37 = vpop.f32.mrf.mxu1 }
  0xaf   :  { %176 = vmatmul.f32.vlgmr.msra.gmra.mxu2 %v144_v35  ;;  %196 = vmatmul.f32.vlgmr.msra.gmra.mxu3 %v144_v35  ;;  %v1065_v38 = vadd.f32 %v141_v37, %v103_v36 }
  0xb0   :  { %388 = vmatpush.msra.mxu2 %v805_v0  ;;  %408 = vmatpush.msra.mxu3 %v818_v4 }
  0xb1   :  { %146 = vmax.xlane.f32.xlu0 %v1065_v38 }
  0xb2   :  { %389 = vmatpush.msra.mxu2 %v807_v1  ;;  %409 = vmatpush.msra.mxu3 %v824_v6 }
  0xb4   :  { %390 = vmatpush.msra.mxu2 %v811_v2  ;;  %410 = vmatpush.msra.mxu3 %v828_v7 }
  0xb6   :  { %391 = vmatpush.msra.mxu2 %v815_v3  ;;  %411 = vmatpush.msra.mxu3 %v836_v9 }
  0xb8   :  { %392 = vmatpush.msra.mxu2 %v821_v5  ;;  %412 = vmatpush.msra.mxu3 %v844_v11 }
  0xba   :  { %393 = vmatpush.msra.mxu2 %v831_v8  ;;  %413 = vmatpush.msra.mxu3 %v852_v13 }
  0xbc   :  { %394 = vmatpush.msra.mxu2 %v839_v10  ;;  %414 = vmatpush.msra.mxu3 %v860_v15 }
  0xbe   :  { %395 = vmatpush.msra.mxu2 %v847_v12  ;;  %415 = vmatpush.msra.mxu3 %v868_v17 }
  0xc0   :  { %396 = vmatpush.msra.mxu2 %v855_v14  ;;  %416 = vmatpush.msra.mxu3 %v876_v19 }
  0xc2   :  { %397 = vmatpush.msra.mxu2 %v863_v16  ;;  %417 = vmatpush.msra.mxu3 %v884_v21 }
  0xc4   :  { %398 = vmatpush.msra.mxu2 %v871_v18  ;;  %418 = vmatpush.msra.mxu3 %v892_v23 }
  0xc6   :  { %399 = vmatpush.msra.mxu2 %v879_v20  ;;  %419 = vmatpush.msra.mxu3 %v900_v25 }
  0xc8   :  { %400 = vmatpush.msra.mxu2 %v887_v22  ;;  %420 = vmatpush.msra.mxu3 %v908_v27 }
  0xca   :  { %401 = vmatpush.msra.mxu2 %v895_v24  ;;  %421 = vmatpush.msra.mxu3 %v918_v30 }
  0xcc   :  { %402 = vmatpush.msra.mxu2 %v903_v26  ;;  %422 = vmatpush.msra.mxu3 %v924_v31 }
  0xce   :  { %403 = vmatpush.msra.mxu2 %v911_v28  ;;  %423 = vmatpush.msra.mxu3 %v980_v32 }
 0x124   :  { %v147_v63 = vpop.xlane.xlu0 %146 }
 0x132   :  { %v177_v41 = vpop.f32.mrf.mxu2  ;;  %v197_v42 = vpop.f32.mrf.mxu3 }
 0x133   :  { %v200_v43 = vadd.f32 %v177_v41, %v158_v39  ;;  %v1068_v44 = vadd.f32 %v197_v42, %v159_v40 }
 0x135   :  { %202 = vmax.xlane.f32.xlu0 %v1068_v44  ;;  %233 = vmatmul.f32.vlgmr.msrb.gmra.mxu0 %v200_v43 }
 0x136   :  { %253 = vmatmul.f32.vlgmr.msrb.gmra.mxu1 %v200_v43  ;;  %445 = vmatpush.msrb.mxu0 %v805_v0  ;;  %v500_v43 = vld [vmem:[#allocation2 + $0x70] sm:$0xff] }
 0x137   :  { %465 = vmatpush.msrb.mxu1 %v818_v4 }
 0x138   :  { %446 = vmatpush.msrb.mxu0 %v807_v1 }
 0x139   :  { %466 = vmatpush.msrb.mxu1 %v824_v6 }
 0x13a   :  { %447 = vmatpush.msrb.mxu0 %v811_v2 }
 0x13b   :  { %467 = vmatpush.msrb.mxu1 %v828_v7 }
 0x13c   :  { %448 = vmatpush.msrb.mxu0 %v815_v3 }
 0x13d   :  { %468 = vmatpush.msrb.mxu1 %v836_v9 }
 0x13e   :  { %449 = vmatpush.msrb.mxu0 %v821_v5 }
 0x13f   :  { %469 = vmatpush.msrb.mxu1 %v844_v11 }
 0x140   :  { %450 = vmatpush.msrb.mxu0 %v831_v8 }
 0x141   :  { %470 = vmatpush.msrb.mxu1 %v852_v13 }
 0x142   :  { %451 = vmatpush.msrb.mxu0 %v839_v10 }
 0x143   :  { %471 = vmatpush.msrb.mxu1 %v860_v15 }
 0x144   :  { %452 = vmatpush.msrb.mxu0 %v847_v12 }
 0x145   :  { %472 = vmatpush.msrb.mxu1 %v868_v17 }
 0x146   :  { %453 = vmatpush.msrb.mxu0 %v855_v14 }
 0x147   :  { %473 = vmatpush.msrb.mxu1 %v876_v19 }
 0x148   :  { %454 = vmatpush.msrb.mxu0 %v863_v16 }
 0x149   :  { %474 = vmatpush.msrb.mxu1 %v884_v21 }
 0x14a   :  { %455 = vmatpush.msrb.mxu0 %v871_v18 }
 0x14b   :  { %475 = vmatpush.msrb.mxu1 %v892_v23 }
 0x14c   :  { %456 = vmatpush.msrb.mxu0 %v879_v20 }
 0x14d   :  { %476 = vmatpush.msrb.mxu1 %v900_v25 }
 0x14e   :  { %457 = vmatpush.msrb.mxu0 %v887_v22 }
 0x14f   :  { %477 = vmatpush.msrb.mxu1 %v908_v27 }
 0x150   :  { %458 = vmatpush.msrb.mxu0 %v895_v24 }
 0x151   :  { %478 = vmatpush.msrb.mxu1 %v918_v30 }
 0x152   :  { %459 = vmatpush.msrb.mxu0 %v903_v26 }
 0x153   :  { %479 = vmatpush.msrb.mxu1 %v924_v31 }
 0x154   :  { %460 = vmatpush.msrb.mxu0 %v911_v28 }
 0x155   :  { %480 = vmatpush.msrb.mxu1 %v980_v32 }
 0x1b2   :  { %v234_v47 = vpop.f32.mrf.mxu0 }
 0x1b3   :  { %v257_v48 = vadd.f32 %v234_v47, %v215_v45  ;;  %v254_v49 = vpop.f32.mrf.mxu1 }
 0x1b4   :  { %v1103_v50 = vadd.f32 %v254_v49, %v216_v46 }
 0x1b5   :  { %290 = vmatmul.f32.vlgmr.msrb.gmra.mxu2 %v257_v48  ;;  %310 = vmatmul.f32.vlgmr.msrb.gmra.mxu3 %v257_v48 }
 0x1b6   :  { %259 = vmax.xlane.f32.xlu1 %v1103_v50  ;;  %502 = vmatpush.msrb.mxu2 %v805_v0 }
 0x1b7   :  { %522 = vmatpush.msrb.mxu3 %v818_v4  ;;  %v387_v4 = vld [vmem:[#allocation2 + $0x58] sm:$0xff] }
 0x1b8   :  { %503 = vmatpush.msrb.mxu2 %v807_v1  ;;  %v148_v1 = vsub.f32 %v1065_v38, %v147_v63 }
 0x1b9   :  { %523 = vmatpush.msrb.mxu3 %v824_v6 }
 0x1ba   :  { %504 = vmatpush.msrb.mxu2 %v811_v2  ;;  %v149_v2 = vmul.f32 1.442695, %v148_v1 }
 0x1bb   :  { %524 = vmatpush.msrb.mxu3 %v828_v7 }
 0x1bc   :  { %505 = vmatpush.msrb.mxu2 %v815_v3  ;;  %v386_v3 = vld [vmem:[#allocation2 + $0x50] sm:$0xff]  ;;  %602 = vpow2.f32 %v149_v2 }
 0x1bd   :  { %525 = vmatpush.msrb.mxu3 %v836_v9 }
 0x1be   :  { %506 = vmatpush.msrb.mxu2 %v821_v5 }
 0x1bf   :  { %526 = vmatpush.msrb.mxu3 %v844_v11 }
 0x1c0   :  { %507 = vmatpush.msrb.mxu2 %v831_v8 }
 0x1c1   :  { %527 = vmatpush.msrb.mxu3 %v852_v13 }
 0x1c2   :  { %508 = vmatpush.msrb.mxu2 %v839_v10  ;;  %v603_v11 = vpop.eup %602 }
 0x1c3   :  { %528 = vmatpush.msrb.mxu3 %v860_v15 }
 0x1c4   :  { %509 = vmatpush.msrb.mxu2 %v847_v12 }
 0x1c5   :  { %529 = vmatpush.msrb.mxu3 %v868_v17 }
 0x1c6   :  { %510 = vmatpush.msrb.mxu2 %v855_v14 }
 0x1c7   :  { %530 = vmatpush.msrb.mxu3 %v876_v19  ;;  %v443_v19 = vld [vmem:[#allocation2 + $0x60] sm:$0xff] }
 0x1c8   :  { %511 = vmatpush.msrb.mxu2 %v863_v16  ;;  %v203_v16 = vpop.xlane.xlu0 %202 }
 0x1c9   :  { %531 = vmatpush.msrb.mxu3 %v884_v21  ;;  %v204_v17 = vsub.f32 %v1068_v44, %v203_v16  ;;  %v501_v44 = vld [vmem:[#allocation2 + $0x78] sm:$0xff] }
 0x1ca   :  { %512 = vmatpush.msrb.mxu2 %v871_v18 }
 0x1cb   :  { %532 = vmatpush.msrb.mxu3 %v892_v23 }
 0x1cc   :  { %513 = vmatpush.msrb.mxu2 %v879_v20  ;;  %v444_v20 = vld [vmem:[#allocation2 + $0x68] sm:$0xff] }
 0x1cd   :  { %533 = vmatpush.msrb.mxu3 %v900_v25 }
 0x1ce   :  { %514 = vmatpush.msrb.mxu2 %v887_v22  ;;  %v205_v22 = vmul.f32 1.442695, %v204_v17 }
 0x1cf   :  { %534 = vmatpush.msrb.mxu3 %v908_v27 }
 0x1d0   :  { %515 = vmatpush.msrb.mxu2 %v895_v24 }
 0x1d1   :  { %535 = vmatpush.msrb.mxu3 %v918_v30 }
 0x1d2   :  { %516 = vmatpush.msrb.mxu2 %v903_v26 }
 0x1d3   :  { %536 = vmatpush.msrb.mxu3 %v924_v31 }
 0x1d4   :  { %517 = vmatpush.msrb.mxu2 %v911_v28 }
 0x1d5   :  { %537 = vmatpush.msrb.mxu3 %v980_v32 }
 0x229   :  { %v260_v0 = vpop.xlane.xlu1 %259 }
 0x22a   :  { %v261_v42 = vsub.f32 %v1103_v50, %v260_v0 }
 0x22c   :  { %v262_v46 = vmul.f32 1.442695, %v261_v42 }
 0x238   :  { %v291_v53 = vpop.f32.mrf.mxu2  ;;  %v311_v54 = vpop.f32.mrf.mxu3 }
 0x239   :  { %v314_v55 = vadd.f32 %v291_v53, %v272_v51  ;;  %v315_v56 = vadd.f32 %v311_v54, %v273_v52 }
 0x23b   :  { %316 = vmax.xlane.f32.xlu1 %v315_v56  ;;  %347 = vmatmul.f32.vlgmr.msra.gmra.mxu0 %v314_v55 }
 0x23c   :  { %367 = vmatmul.f32.vlgmr.msra.gmra.mxu1 %v314_v55 }
 0x2ae   :  { %v317_v7 = vpop.xlane.xlu1 %316 }
 0x2af   :  { %v318_v10 = vsub.f32 %v315_v56, %v317_v7 }
 0x2b1   :  { %v319_v12 = vmul.f32 1.442695, %v318_v10 }
 0x2b3   :  { %604 = vpow2.f32 %v319_v12 }
 0x2b8   :  { %v348_v59 = vpop.f32.mrf.mxu0 }
 0x2b9   :  { %v371_v60 = vadd.f32 %v348_v59, %v329_v57  ;;  %v368_v61 = vpop.f32.mrf.mxu1  ;;  %v605_v13 = vpop.eup %604 }
 0x2ba   :  { %v372_v62 = vadd.f32 %v368_v61, %v330_v58 }
 0x2bb   :  { %404 = vmatmul.f32.vlgmr.msra.gmra.mxu2 %v371_v60  ;;  %424 = vmatmul.f32.vlgmr.msra.gmra.mxu3 %v371_v60 }
 0x2bc   :  { %373 = vmax.xlane.f32.xlu2 %v372_v62 }
 0x32f   :  { %v374_v14 = vpop.xlane.xlu2 %373 }
 0x330   :  { %v375_v27 = vsub.f32 %v372_v62, %v374_v14 }
 0x332   :  { %v376_v31 = vmul.f32 1.442695, %v375_v27 }
 0x33e   :  { %v405_v5 = vpop.f32.mrf.mxu2  ;;  %v425_v6 = vpop.f32.mrf.mxu3 }
 0x33f   :  { %v428_v8 = vadd.f32 %v405_v5, %v386_v3  ;;  %v1139_v9 = vadd.f32 %v425_v6, %v387_v4 }
 0x341   :  { %430 = vmax.xlane.f32.xlu2 %v1139_v9  ;;  %461 = vmatmul.f32.vlgmr.msrb.gmra.mxu0 %v428_v8 }
 0x342   :  { %481 = vmatmul.f32.vlgmr.msrb.gmra.mxu1 %v428_v8 }
 0x349   :  { %151 = vadd.xlane.f32.xlu2 %v603_v11 }
 0x351   :  { %321 = vadd.xlane.f32.xlu2 %v605_v13 }
 0x3b4   :  { %v431_v15 = vpop.xlane.xlu2 %430 }
 0x3b5   :  { %v432_v55 = vsub.f32 %v1139_v9, %v431_v15 }
 0x3b7   :  { %v433_v56 = vmul.f32 1.442695, %v432_v55 }
 0x3bc   :  { %v152_v18 = vpop.xlane.xlu2 %151 }
 0x3bd   :  { %606 = vlog2.f32 %v152_v18 }
 0x3be   :  { %v462_v21 = vpop.f32.mrf.mxu0  ;;  %608 = vpow2.f32 %v205_v22 }
 0x3bf   :  { %v485_v23 = vadd.f32 %v462_v21, %v443_v19  ;;  %v482_v24 = vpop.f32.mrf.mxu1 }
 0x3c0   :  { %v486_v25 = vadd.f32 %v482_v24, %v444_v20 }
 0x3c1   :  { %518 = vmatmul.f32.vlgmr.msrb.gmra.mxu2 %v485_v23  ;;  %538 = vmatmul.f32.vlgmr.msrb.gmra.mxu3 %v485_v23 }
 0x3c2   :  { %487 = vmax.xlane.f32.xlu0 %v486_v25 }
 0x3c3   :  { %v607_v26 = vpop.eup %606 }
 0x3c4   :  { %v154_v28 = vmul.f32 0.6931472, %v607_v26  ;;  %v322_v29 = vpop.xlane.xlu2 %321  ;;  %v609_v32 = vpop.eup %608 }
 0x3c5   :  { %610 = vlog2.f32 %v322_v29 }
 0x3c6   :  { %v155_v30 = vsub.f32 %v148_v1, %v154_v28  ;;  %612 = vpow2.f32 %v376_v31 }
 0x3c8   :  { %156 = vst [vmem:[#allocation8] sm:$0xff] %v155_v30 }
 0x3ca   :  { %207 = vadd.xlane.f32.xlu0 %v609_v32 }
 0x3cb   :  { %v611_v33 = vpop.eup %610 }
 0x3cc   :  { %v324_v34 = vmul.f32 0.6931472, %v611_v33  ;;  %v613_v36 = vpop.eup %612 }
 0x3ce   :  { %v325_v35 = vsub.f32 %v318_v10, %v324_v34 }
 0x3d0   :  { %327 = vst [vmem:[#allocation8 + $0x18] sm:$0xff] %v325_v35 }
 0x3d2   :  { %378 = vadd.xlane.f32.xlu0 %v613_v36 }
 0x435   :  { %v488_v37 = vpop.xlane.xlu0 %487 }
 0x436   :  { %v489_v38 = vsub.f32 %v486_v25, %v488_v37 }
 0x438   :  { %v490_v39 = vmul.f32 1.442695, %v489_v38 }
 0x43a   :  { %614 = vpow2.f32 %v490_v39 }
 0x43d   :  { %v208_v40 = vpop.xlane.xlu0 %207 }
 0x43e   :  { %616 = vlog2.f32 %v208_v40 }
 0x440   :  { %v615_v41 = vpop.eup %614 }
 0x441   :  { %492 = vadd.xlane.f32.xlu2 %v615_v41 }
 0x444   :  { %v617_v45 = vpop.eup %616  ;;  %v519_v47 = vpop.f32.mrf.mxu2 }
 0x445   :  { %v539_v48 = vpop.f32.mrf.mxu3  ;;  %v210_v49 = vmul.f32 0.6931472, %v617_v45  ;;  %v379_v51 = vpop.xlane.xlu0 %378  ;;  %v542_v52 = vadd.f32 %v519_v47, %v500_v43 }
 0x446   :  { %v543_v53 = vadd.f32 %v539_v48, %v501_v44  ;;  %618 = vlog2.f32 %v379_v51 }
 0x447   :  { %v211_v54 = vsub.f32 %v204_v17, %v210_v49  ;;  %556 = vst [vmem:[#allocation9] sm:$0xff] %v542_v52  ;;  %620 = vpow2.f32 %v262_v46 }
 0x448   :  { %544 = vmax.xlane.f32.xlu1 %v543_v53  ;;  %622 = vpow2.f32 %v433_v56  ;;  %580 = dma.vmem_to_hbm [thread:$0]  %s576_s2, 128, %s578_s7, [#allocation10]  }
 0x449   :  { %213 = vst [vmem:[#allocation8 + $0x8] sm:$0xff] %v211_v54 }
 0x44c   :  { %v619_v50 = vpop.eup %618 }
 0x44d   :  { %v381_v57 = vmul.f32 0.6931472, %v619_v50  ;;  %v621_v58 = vpop.eup %620 }
 0x44e   :  { %v623_v60 = vpop.eup %622 }
 0x44f   :  { %v382_v59 = vsub.f32 %v375_v27, %v381_v57 }
 0x450   :  { %264 = vadd.xlane.f32.xlu1 %v621_v58 }
 0x451   :  { %384 = vst [vmem:[#allocation8 + $0x20] sm:$0xff] %v382_v59 }
 0x458   :  { %435 = vadd.xlane.f32.xlu1 %v623_v60 }
 0x4b4   :  { %v493_v61 = vpop.xlane.xlu2 %492 }
 0x4b5   :  { %624 = vlog2.f32 %v493_v61 }
 0x4bb   :  { %v545_v62 = vpop.xlane.xlu1 %544  ;;  %v625_v63 = vpop.eup %624 }
 0x4bc   :  { %v546_v0 = vsub.f32 %v543_v53, %v545_v62  ;;  %v495_v1 = vmul.f32 0.6931472, %v625_v63 }
 0x4be   :  { %v547_v2 = vmul.f32 1.442695, %v546_v0  ;;  %v496_v3 = vsub.f32 %v489_v38, %v495_v1 }
 0x4c0   :  { %626 = vpow2.f32 %v547_v2  ;;  %498 = vst [vmem:[#allocation8 + $0x30] sm:$0xff] %v496_v3 }
 0x4c3   :  { %v265_v4 = vpop.xlane.xlu1 %264 }
 0x4c4   :  { %628 = vlog2.f32 %v265_v4 }
 0x4c6   :  { %v627_v5 = vpop.eup %626 }
 0x4c7   :  { %549 = vadd.xlane.f32.xlu0 %v627_v5 }
 0x4ca   :  { %v629_v6 = vpop.eup %628 }
 0x4cb   :  { %v267_v7 = vmul.f32 0.6931472, %v629_v6  ;;  %v436_v8 = vpop.xlane.xlu1 %435 }
 0x4cc   :  { %630 = vlog2.f32 %v436_v8 }
 0x4cd   :  { %v268_v9 = vsub.f32 %v261_v42, %v267_v7 }
 0x4cf   :  { %270 = vst [vmem:[#allocation8 + $0x10] sm:$0xff] %v268_v9 }
 0x4d2   :  { %v631_v10 = vpop.eup %630 }
 0x4d3   :  { %v438_v11 = vmul.f32 0.6931472, %v631_v10 }
 0x4d5   :  { %v439_v12 = vsub.f32 %v432_v55, %v438_v11 }
 0x4d7   :  { %441 = vst [vmem:[#allocation8 + $0x28] sm:$0xff] %v439_v12 }
 0x53a   :  { %v550_v13 = vpop.xlane.xlu0 %549 }
 0x53b   :  { %632 = vlog2.f32 %v550_v13 }
 0x541   :  { %v633_v14 = vpop.eup %632 }
 0x542   :  { %v552_v15 = vmul.f32 0.6931472, %v633_v14 }
 0x544   :  { %v553_v16 = vsub.f32 %v546_v0, %v552_v15 }
 0x546   :  { %555 = vst [vmem:[#allocation8 + $0x38] sm:$0xff] %v553_v16 }
 0x547   :  { %569 = dma.vmem_to_hbm [thread:$0]  %s562_s9, 1024, %s564_s4, [#allocation4], %s769_s12, %s769_s12, %s770_s13  }
 0x548   :  { %758 = dma.done.wait [#allocation4], 1024  }
 0x549   :  { %759 = vsyncadd [#allocation4], 4294966272 }
 0x54a   :  { %760 = dma.done.wait [#allocation10], 128  }
 0x54b   :  { %761 = vsyncadd [#allocation10], 4294967168 }
 0x54c   :  { %589 = vsyncpa [#allocation3], 1 }
 0x54d   :  { %590 = vsyncpa [#allocation6], 1 }
 0x54e   :  { %591 = vsyncpa [#allocation4], 1 }
 0x54f   :  { %592 = vsyncpa [#allocation10], 1 }

</bundles_post_ra>
